<compile_context>
chip_gen: v7x
topology: tpu7x:2x2x1
jax: 0.10.0
libtpu: 0.0.40
codegen_flags: <defaults>
</compile_context>

<pallas_src>
import functools
import math

import jax
import jax.numpy as jnp
from jax.experimental import pallas as pl
from jax.experimental.pallas import tpu as pltpu

LANES = 128
LANE_WIDTH = 4 * LANES     # 512-wide lane-dense rows
ROW_TILE = 1024            # (1024, 512) f32 block = 2 MiB


def _retanh_kernel(x_ref, o_ref, *, beta):
    # Elementwise hot path: beta * tanh(x), rectified with fmax-vs-zero semantics.
    x = x_ref[...].astype(jnp.float32)
    t = jnp.float32(beta) * jnp.tanh(x)
    # torch.fmax(0, t): NaN -> 0, else max(0, t).  (NaN > 0) is False, so where picks 0.
    o_ref[...] = jnp.where(t > jnp.float32(0.0), t, jnp.float32(0.0))


def _sublane_multiple(dtype):
    # Native sublane tile: 8 for 4-byte, 16 for 2-byte (bf16), 32 for 1-byte dtypes.
    itemsize = jnp.dtype(dtype).itemsize
    return max(8, 32 // max(int(itemsize), 1))


def retanh(x, alpha=1.0, *, row_tile=ROW_TILE):
    """ReTanh forward: fmax(0, (alpha / tanh(1)) * tanh(x)). Returns float32."""
    # beta computed at float64 precision on the host (matches torch's f64 constant).
    beta = float(alpha) / math.tanh(1.0)

    orig_shape = x.shape
    n_elem = int(x.size)
    if n_elem == 0:
        return jnp.zeros(orig_shape, jnp.float32)

    # Flatten to a lane-dense 2D slab (rows, LANE_WIDTH). Pad only when needed:
    # jnp.pad is a full extra HBM pass, so the branch is explicit/static.
    padded = pl.cdiv(n_elem, LANE_WIDTH) * LANE_WIDTH
    x_flat = jnp.reshape(x, (-1,))
    if padded != n_elem:
        x_flat = jnp.pad(x_flat, (0, padded - n_elem))
    rows = padded // LANE_WIDTH
    x2d = jnp.reshape(x_flat, (rows, LANE_WIDTH))

    # Large fixed tile; ragged last block handled by the cdiv grid + masking.
    sub = _sublane_multiple(x.dtype)
    if rows <= sub:
        # Tiny input: block row dim equals the full array dim (always legal).
        tile_r = rows
    else:
        # Cap at half the rows (rounded up to the sublane tile) so the grid has
        # >= 2 steps when possible and both v7x TensorCores get work.
        half_rows = pl.cdiv(pl.cdiv(rows, 2), sub) * sub
        tile_r = max(sub, min(row_tile, half_rows))
    grid = (pl.cdiv(rows, tile_r),)

    out2d = pl.pallas_call(
        functools.partial(_retanh_kernel, beta=beta),
        out_shape=jax.ShapeDtypeStruct((rows, LANE_WIDTH), jnp.float32),
        grid_spec=pltpu.PrefetchScalarGridSpec(
            num_scalar_prefetch=0,
            grid=grid,
            in_specs=[pl.BlockSpec((tile_r, LANE_WIDTH), lambda i: (i, 0))],
            out_specs=pl.BlockSpec((tile_r, LANE_WIDTH), lambda i: (i, 0)),
        ),
        compiler_params=pltpu.CompilerParams(
            dimension_semantics=("parallel",),
            # Safeguard: keeps v5e (16 MiB default scoped VMEM) happy if row_tile
            # is raised; still within v7x's scoped default.
            vmem_limit_bytes=32 * 1024 * 1024,
        ),
        cost_estimate=pl.CostEstimate(
            flops=2 * padded,
            transcendentals=padded,
            bytes_accessed=int(x2d.dtype.itemsize) * padded + 4 * padded,
        ),
    )(x2d)

    if padded == n_elem:
        return jnp.reshape(out2d, orig_shape)
    # Unaligned input: trailing slice is unavoidable (one extra output pass).
    out_flat = jnp.reshape(out2d, (-1,))[:n_elem]
    return jnp.reshape(out_flat, orig_shape)


def _retanh_ref(x, alpha=1.0):
    beta = float(alpha) / math.tanh(1.0)
    t = beta * jnp.tanh(x.astype(jnp.float32))
    return jnp.where(jnp.isnan(t), 0.0, jnp.maximum(0.0, t)).astype(jnp.float32)


if __name__ == "__main__":
    key = jax.random.PRNGKey(0)

    # NCHW, as in the PyTorch conv convention (aligned size: 2048 elements).
    x = jax.random.normal(key, (2, 4, 16, 16), dtype=jnp.float32) * 2.0
    out = jax.block_until_ready(retanh(x, alpha=1.0))
    ref = _retanh_ref(x, alpha=1.0)
    assert out.shape == x.shape and out.dtype == jnp.float32
    assert jnp.allclose(out, ref, atol=1e-5, rtol=1e-5), "mismatch vs reference (aligned)"

    # Unaligned element count exercises the pad / tail-slice path.
    key2 = jax.random.PRNGKey(0)
    x2 = jax.random.normal(key2, (2, 3, 7, 11), dtype=jnp.float32) * 3.0
    out2 = jax.block_until_ready(retanh(x2, alpha=0.5))
    ref2 = _retanh_ref(x2, alpha=0.5)
    assert out2.shape == x2.shape
    assert jnp.allclose(out2, ref2, atol=1e-5, rtol=1e-5), "mismatch vs reference (unaligned)"

    # Larger aligned case exercises a multi-step grid (rows=64 -> 2 blocks).
    key3 = jax.random.PRNGKey(0)
    x3 = jax.random.normal(key3, (4, 8, 32, 32), dtype=jnp.float32)
    out3 = jax.block_until_ready(retanh(x3, alpha=2.0))
    ref3 = _retanh_ref(x3, alpha=2.0)
    assert jnp.allclose(out3, ref3, atol=1e-5, rtol=1e-5), "mismatch vs reference (multi-block)"

    print("KERNEL_OK")
</pallas_src>

<mosaic_0001>
module attributes {stable_mosaic.version = 11 : i64} {
  func.func @_retanh_kernel(%arg0: i32, %arg1: memref<4x512xf32, #tpu.memory_space<vmem>>, %arg2: memref<4x512xf32, #tpu.memory_space<vmem>>) attributes {dimension_semantics = [#tpu.dimension_semantics<parallel>], iteration_bounds = array<i64: 1>, scalar_prefetch = 0 : i64, scratch_operands = 0 : i64, tpu.core_type = #tpu.core_type<tc>, window_params = [{transform_indices = @transform_0, window_bounds = array<i64: 4, 512>}, {transform_indices = @transform_1, window_bounds = array<i64: 4, 512>}]} {
    %c0 = arith.constant 0 : index
    %c0_0 = arith.constant 0 : index
    %0 = vector.load %arg1[%c0, %c0_0] : memref<4x512xf32, #tpu.memory_space<vmem>>, vector<4x512xf32>
    %1 = math.tanh %0 : vector<4x512xf32>
    %cst = arith.constant 1.31303525 : f32
    %2 = vector.broadcast %cst : f32 to vector<4x512xf32>
    %3 = arith.mulf %2, %1 : vector<4x512xf32>
    %cst_1 = arith.constant 0.000000e+00 : f32
    %4 = vector.broadcast %cst_1 : f32 to vector<4x512xf32>
    %5 = arith.cmpf ogt, %3, %4 : vector<4x512xf32>
    %cst_2 = arith.constant 0.000000e+00 : f32
    %6 = vector.broadcast %cst_2 : f32 to vector<4x512xf32>
    %7 = arith.select %5, %3, %6 : vector<4x512xi1>, vector<4x512xf32>
    %c0_3 = arith.constant 0 : index
    %c0_4 = arith.constant 0 : index
    %8 = vector.load %arg2[%c0_3, %c0_4] : memref<4x512xf32, #tpu.memory_space<vmem>>, vector<4x512xf32>
    tpu.vector_store %arg2[%c0_3, %c0_4], %7 {strides = array<i32>} : memref<4x512xf32, #tpu.memory_space<vmem>>, vector<4x512xf32>,
    return
  }
  func.func @transform_0(%arg0: i32) -> (i32, i32) {
    %c0_i32 = arith.constant 0 : i32
    %c0_i32_0 = arith.constant 0 : i32
    return %arg0, %c0_i32 : i32, i32
  }
  func.func @transform_1(%arg0: i32) -> (i32, i32) {
    %c0_i32 = arith.constant 0 : i32
    %c0_i32_0 = arith.constant 0 : i32
    return %arg0, %c0_i32 : i32, i32
  }
}

</mosaic_0001>

<bundles_post_ra>
// kernel: tpu_custom_call.1
= control target key start
LH: loop header
LB: loop body
LE: loop exit
PB: predicated region body
PF: predicated region fallthrough
CT: control target
= control target key end

     0   :  { %6 = vsyncpa [#allocation3], 0  ;;  %s138_s0 = inlined_call_operand.hbm [shape: f32[4,512], index: 0, kind: input, shape index: {}]   ;;  %s139_s1 = inlined_call_operand.hbm [shape: f32[4,512], index: 1, kind: output, shape index: {}]  }
   0x1   :  { %7 = vsyncpa [#allocation4], 0  ;;  %s102_s6 = smov [#allocation2]   ;;  %s54_s10 = scalar_lea.hbm %s138_s0, 256 }
   0x2   :  { %s14_s7 = sshll.u32 %s102_s6, 4  ;;  %p55_p0 = scmp.ne.s32.totalorder %s138_s0, %s54_s10  ;;  %s15_s7 = int_to_ptr.vmem [resolvable:$true] %s14_s7 }
   0x3   :  { %p58_p1 = scmp.lt.u32.totalorder %s54_s10, %s138_s0 }
   0x5   :  { %p60_p2 = pnand %p58_p1, %p55_p0 }
   0x7   :  { %63 = shalt.err (!%p60_p2)
}
   0x8   :  { %s64_s15 = scalar_lea.vmem %s15_s7, 256  ;;  %p69_p4 = scmp.lt.s32.totalorder %s15_s7, %s15_s7 }
   0x9   :  { %p65_p3 = scmp.ne.s32.totalorder %s15_s7, %s64_s15  ;;  %p70_p5 = scmp.lt.s32.totalorder %s64_s15, %s64_s15 }
   0xb   :  { %p71_p6 = por %p70_p5, %p69_p4 }
   0xd   :  { %p72_p7 = pnand %p71_p6, %p65_p3 }
   0xf   :  { %75 = shalt.err (!%p72_p7)
}
  0x10   :  { %17 = dma.hbm_to_vmem [thread:$0]  %s138_s0, 256, %s15_s7, [#allocation3]  }
  0x11   :  { %98 = dma.done.wait [#allocation3], 256  }
  0x12   :  { %99 = vsyncadd [#allocation3], 4294967040  ;;  %v21_v0 = vld [vmem:[#allocation2] sm:$0xff]  ;;  %v22_v1 = vld [vmem:[#allocation2 + $0x8] sm:$0xff]  ;;  %s103_s18 = smov [#allocation5]  }
  0x13   :  { %50 = vtanh.f32 %v21_v0  ;;  %s39_s19 = sshll.u32 %s103_s18, 4  ;;  %s40_s19 = int_to_ptr.vmem [resolvable:$true] %s39_s19 }
  0x14   :  { %52 = vtanh.f32 %v22_v1  ;;  %s76_s0 = scalar_lea.vmem %s40_s19, 256  ;;  %p81_p9 = scmp.lt.s32.totalorder %s40_s19, %s40_s19 }
  0x15   :  { %p77_p8 = scmp.ne.s32.totalorder %s40_s19, %s76_s0  ;;  %p82_p10 = scmp.lt.s32.totalorder %s76_s0, %s76_s0 }
  0x17   :  { %p83_p11 = por %p82_p10, %p81_p9 }
  0x19   :  { %p84_p12 = pnand %p83_p11, %p77_p8 }
  0x1d   :  { %v51_v2 = vpop.eup %50 }
  0x1e   :  { %v53_v3 = vpop.eup %52  ;;  %v25_v4 = vmul.f32 1.3130352, %v51_v2 }
  0x1f   :  { %v26_v5 = vmul.f32 1.3130352, %v53_v3 }
  0x20   :  { %vm27_vm0 = vcmp.gt.f32.partialorder %v25_v4, 0.0 }
  0x21   :  { %v29_v6 = vsel %vm27_vm0, %v25_v4, 0.0  ;;  %vm28_vm1 = vcmp.gt.f32.partialorder %v26_v5, 0.0 }
  0x22   :  { %31 = vst [vmem:[#allocation5] sm:$0xff] %v29_v6  ;;  %v30_v7 = vsel %vm28_vm1, %v26_v5, 0.0 }
  0x23   :  { %32 = vst [vmem:[#allocation5 + $0x8] sm:$0xff] %v30_v7 }
  0x24   :  { %87 = shalt.err (!%p84_p12)
}
  0x25   :  { %s88_s22 = scalar_lea.hbm %s139_s1, 256 }
  0x26   :  { %p89_p13 = scmp.ne.s32.totalorder %s139_s1, %s88_s22  ;;  %p92_p0 = scmp.lt.u32.totalorder %s88_s22, %s139_s1 }
  0x28   :  { %p94_p1 = pnand %p92_p0, %p89_p13 }
  0x2a   :  { %97 = shalt.err (!%p94_p1)
}
  0x2b   :  { %42 = dma.vmem_to_hbm [thread:$0]  %s40_s19, 256, %s139_s1, [#allocation4]  }
  0x2c   :  { %100 = dma.done.wait [#allocation4], 256  }
  0x2d   :  { %101 = vsyncadd [#allocation4], 4294967040 }
  0x2e   :  { %46 = vsyncpa [#allocation3], 1 }
  0x2f   :  { %47 = vsyncpa [#allocation4], 1 }

</bundles_post_ra>
